<compile_context>
chip_gen: v5e
topology: v5e:2x2
jax: 0.10.0
libtpu: 0.0.40
codegen_flags: <defaults>
</compile_context>

<pallas_src>
import functools

import jax
import jax.numpy as jnp
from jax.experimental import pallas as pl
from jax.experimental.pallas import tpu as pltpu


def _round_up(x, m):
    return ((x + m - 1) // m) * m


def _sublane_pack(dtype):
    # Minimum second-minor multiple for a dtype: 8 (f32), 16 (bf16), 32 (i8/fp8).
    return max(8, 32 // jnp.dtype(dtype).itemsize)


def _erf(z):
    # Abramowitz & Stegun 7.1.26 polynomial approximation (|err| <= 1.5e-7),
    # built from VPU/EUP ops only.  The divide is an EUP approximate
    # reciprocal refined with one Newton step (error ~ eps^2), so the overall
    # gelu stays within the f32-level numeric budget.
    a1, a2, a3, a4, a5 = (0.254829592, -0.284496736, 1.421413741,
                          -1.453152027, 1.061405429)
    p = 0.3275911
    sgn = jnp.where(z >= 0.0, 1.0, -1.0)
    az = jnp.abs(z)
    d = 1.0 + p * az
    r = pl.reciprocal(d, approx=True)
    t = r * (2.0 - d * r)                      # one Newton refinement
    poly = ((((a5 * t + a4) * t + a3) * t + a2) * t + a1) * t
    return sgn * (1.0 - poly * jnp.exp(-az * az))


def _mph_kernel(eps, x_ref, wd_ref, pb_ref, wv_ref, bv_ref, out_ref, h_ref):
    j = pl.program_id(1)

    # Dense -> gelu -> fp32 LayerNorm: computed once per token tile (vocab
    # step 0) and cached in VMEM scratch in the matmul operand dtype.
    @pl.when(j == 0)
    def _():
        x = x_ref[...].astype(wd_ref.dtype)
        h = jnp.dot(x, wd_ref[...], preferred_element_type=jnp.float32)
        pb = pb_ref[...].astype(jnp.float32)        # (3, H): [bd; gamma; beta]
        h = h + pb[0:1, :]
        # exact gelu: 0.5 * x * (1 + erf(x / sqrt(2)))
        h = 0.5 * h * (1.0 + _erf(h * 0.7071067811865476))
        # Fp32LayerNorm over the hidden dim (eps inside the sqrt), then affine.
        mean = jnp.mean(h, axis=-1, keepdims=True)
        c = h - mean
        var = jnp.mean(c * c, axis=-1, keepdims=True)
        h = c * jax.lax.rsqrt(var + eps)
        h = h * pb[1:2, :] + pb[2:3, :]
        h_ref[...] = h.astype(h_ref.dtype)          # cast back (Fp32LayerNorm)

    # Decoder tile: (TN, H) @ (H, TV) + bias -> lane-dense (TN, TV) store.
    out = jnp.dot(h_ref[...], wv_ref[...], preferred_element_type=jnp.float32)
    out_ref[...] = (out + bv_ref[...].astype(jnp.float32)).astype(out_ref.dtype)


def prepare_params(dense_w, dense_b, ln_g, ln_b, dec_w, dec_b, *,
                   block_v=1024, matmul_dtype=None):
    """One-time parameter packing, OUTSIDE the per-call path.

    dense_w: [H, H] ([in, out]).  dec_w: [H, V] ([in, out]).
    Pads the decoder weight/bias to whole lane-dense vocab tiles once, folds
    (dense_b, ln_g, ln_b) into a single (3, H) resident array, and optionally
    casts the MXU operands (weights) to `matmul_dtype` (e.g. bf16).
    """
    H, V = dec_w.shape
    tv = min(block_v, _round_up(V, 128))
    v_pad = tv * pl.cdiv(V, tv)
    wv, bv = dec_w, dec_b.reshape(1, V)
    if v_pad != V:
        wv = jnp.pad(wv, ((0, 0), (0, v_pad - V)))
        bv = jnp.pad(bv, ((0, 0), (0, v_pad - V)))
    wd = dense_w
    if matmul_dtype is not None:
        wd = wd.astype(matmul_dtype)
        wv = wv.astype(matmul_dtype)
    pbias = jnp.stack([dense_b.astype(jnp.float32),
                       ln_g.astype(jnp.float32),
                       ln_b.astype(jnp.float32)])            # (3, H)
    return dict(wd=wd, pbias=pbias, wv=wv, bv=bv, H=H, V=V, tv=tv,
                matmul_dtype=matmul_dtype)


def masked_prediction_head(hidden_states, params, *, layer_norm_eps=1e-5,
                           block_n=512, vmem_budget_bytes=64 << 20):
    """hidden_states: [..., H].  params: from prepare_params.  Returns [..., V]."""
    H, V, tv = params["H"], params["V"], params["tv"]
    wd, pbias, wv, bv = params["wd"], params["pbias"], params["wv"], params["bv"]
    v_pad = wv.shape[1]

    lead = hidden_states.shape[:-1]
    x = hidden_states.reshape(-1, H)
    N = x.shape[0]

    h_dtype = params["matmul_dtype"] or hidden_states.dtype
    pack = max(_sublane_pack(hidden_states.dtype), _sublane_pack(h_dtype))

    tn = min(_round_up(block_n, pack), _round_up(N, pack))

    # Keep the (mostly double-buffered) VMEM footprint within the budget.
    def footprint(tn_, tv_):
        xb = jnp.dtype(hidden_states.dtype).itemsize
        wb = jnp.dtype(wd.dtype).itemsize
        hb = jnp.dtype(h_dtype).itemsize
        return (2 * tn_ * H * xb          # x tiles (double buffered)
                + H * H * wb              # dense W (single-buffered resident)
                + 8 * H * 4               # fused bias/LN params (resident)
                + 2 * H * tv_ * wb        # decoder W tiles
                + 2 * 8 * tv_ * 4         # decoder bias tiles
                + 2 * tn_ * tv_ * xb      # output tiles
                + tn_ * H * hb)           # cached transform scratch

    budget = int(0.85 * vmem_budget_bytes)
    while (footprint(tn, tv) > budget and tv >= 256
           and (tv // 2) % 128 == 0 and v_pad % (tv // 2) == 0):
        tv //= 2
    while footprint(tn, tv) > budget and tn > pack:
        tn = max(pack, _round_up(tn // 2, pack))

    n_pad = tn * pl.cdiv(N, tn)
    if n_pad != N:
        x = jnp.pad(x, ((0, n_pad - N), (0, 0)))

    grid = (n_pad // tn, v_pad // tv)
    kernel = functools.partial(_mph_kernel, float(layer_norm_eps))
    out_shape = jax.ShapeDtypeStruct((n_pad, v_pad), hidden_states.dtype)
    scratch = [pltpu.VMEM((tn, H), h_dtype)]
    cparams = pltpu.CompilerParams(
        dimension_semantics=("parallel", "arbitrary"),
        vmem_limit_bytes=int(vmem_budget_bytes))

    def build_specs(single_buffer_resident):
        res = (dict(pipeline_mode=pl.Buffered(1))
               if single_buffer_resident else {})
        in_specs = [
            pl.BlockSpec((tn, H), lambda i, j: (i, 0)),           # x token tile
            pl.BlockSpec((H, H), lambda i, j: (0, 0), **res),     # dense W (resident)
            pl.BlockSpec((3, H), lambda i, j: (0, 0), **res),     # bd/gamma/beta
            pl.BlockSpec((H, tv), lambda i, j: (0, j)),           # decoder W tile
            pl.BlockSpec((1, tv), lambda i, j: (0, j)),           # decoder bias tile
        ]
        out_specs = pl.BlockSpec((tn, tv), lambda i, j: (i, j))
        return in_specs, out_specs

    out, err = None, None
    for single_buffer in (True, False):   # fall back if Buffered(1) is rejected
        in_specs, out_specs = build_specs(single_buffer)
        try:
            out = pl.pallas_call(
                kernel,
                out_shape=out_shape,
                grid=grid,
                in_specs=in_specs,
                out_specs=out_specs,
                scratch_shapes=scratch,
                compiler_params=cparams,
            )(x, wd, pbias, wv, bv)
            break
        except Exception as e:            # noqa: BLE001 - retry with default buffering
            err = e
    if out is None:
        raise err

    if n_pad != N:
        out = out[:N]
    if v_pad != V:
        out = out[:, :V]
    return out.reshape(*lead, V)


def _init_linear(key, fan_in, fan_out):
    # nn.Linear-style U(-1/sqrt(fan_in), +) init, created directly in [in, out]
    # layout (no per-call transpose).
    kw, kb = jax.random.split(key)
    bound = 1.0 / (fan_in ** 0.5)
    w = jax.random.uniform(kw, (fan_in, fan_out), jnp.float32, -bound, bound)
    b = jax.random.uniform(kb, (fan_out,), jnp.float32, -bound, bound)
    return w, b


if __name__ == "__main__":
    # Small shapes: batch=2, seq=8, hidden=32, vocab=64 (padded to 128 lanes
    # once in prepare_params and sliced back).
    B, S, H, V = 2, 8, 32, 64
    key = jax.random.PRNGKey(0)
    k_x, k_d, k_v, k_g, k_b = jax.random.split(key, 5)

    hidden_states = jax.random.normal(k_x, (B, S, H), jnp.float32)
    dense_w, dense_b = _init_linear(k_d, H, H)     # MaskedPredictionHead.dense
    dec_w, dec_b = _init_linear(k_v, H, V)         # decoder (+ bias; module inits
                                                   # bias to 0, random here to
                                                   # exercise the add)
    ln_g = 1.0 + 0.1 * jax.random.normal(k_g, (H,), jnp.float32)
    ln_b = 0.1 * jax.random.normal(k_b, (H,), jnp.float32)

    def ref_head(x, mm_dtype=None):
        # Plain-JAX reference (same math path as the PyTorch module, true erf),
        # dtype-aware so the bf16-operand mode is checked against bf16 math.
        x2 = x.reshape(-1, H)
        wd_, wv_ = dense_w, dec_w
        if mm_dtype is not None:
            x2, wd_, wv_ = x2.astype(mm_dtype), wd_.astype(mm_dtype), wv_.astype(mm_dtype)
        h = jnp.dot(x2, wd_, preferred_element_type=jnp.float32) + dense_b
        h = 0.5 * h * (1.0 + jax.scipy.special.erf(h / jnp.sqrt(2.0)))
        mean = jnp.mean(h, axis=-1, keepdims=True)
        var = jnp.mean((h - mean) ** 2, axis=-1, keepdims=True)
        h = (h - mean) * jax.lax.rsqrt(var + 1e-5) * ln_g + ln_b
        h = h.astype(mm_dtype if mm_dtype is not None else x.dtype)
        out = jnp.dot(h, wv_, preferred_element_type=jnp.float32) + dec_b
        return out.astype(x.dtype).reshape(B, S, V)

    # 1) Full-precision (f32 operand) path.
    params32 = prepare_params(dense_w, dense_b, ln_g, ln_b, dec_w, dec_b)
    out32 = masked_prediction_head(hidden_states, params32, layer_norm_eps=1e-5)
    jax.block_until_ready(out32)
    ref32 = ref_head(hidden_states)
    assert out32.shape == (B, S, V), f"bad output shape {out32.shape}"
    assert jnp.allclose(out32, ref32, atol=3e-4, rtol=3e-4), "f32 output mismatch"

    # 2) bf16-operand MXU path (f32 accumulation), vs. a bf16-aware reference.
    params_bf16 = prepare_params(dense_w, dense_b, ln_g, ln_b, dec_w, dec_b,
                                 matmul_dtype=jnp.bfloat16)
    out_bf16 = masked_prediction_head(hidden_states, params_bf16,
                                      layer_norm_eps=1e-5)
    jax.block_until_ready(out_bf16)
    ref_bf16 = ref_head(hidden_states, mm_dtype=jnp.bfloat16)
    assert out_bf16.shape == (B, S, V), f"bad output shape {out_bf16.shape}"
    assert jnp.allclose(out_bf16, ref_bf16, atol=3e-3, rtol=3e-3), "bf16 output mismatch"

    print("KERNEL_OK")
</pallas_src>

<mosaic_0001>
module attributes {stable_mosaic.version = 11 : i64} {
  func.func @_mph_kernel(%arg0: i32, %arg1: i32, %arg2: memref<16x32xf32, #tpu.memory_space<vmem>>, %arg3: memref<32x32xf32, #tpu.memory_space<vmem>>, %arg4: memref<3x32xf32, #tpu.memory_space<vmem>>, %arg5: memref<32x128xf32, #tpu.memory_space<vmem>>, %arg6: memref<1x128xf32, #tpu.memory_space<vmem>>, %arg7: memref<16x128xf32, #tpu.memory_space<vmem>>, %arg8: memref<16x32xf32, #tpu.memory_space<vmem>>) attributes {dimension_semantics = [#tpu.dimension_semantics<parallel>, #tpu.dimension_semantics<arbitrary>], iteration_bounds = array<i64: 1, 1>, scalar_prefetch = 0 : i64, scratch_operands = 1 : i64, tpu.core_type = #tpu.core_type<tc>, window_params = [{transform_indices = @transform_0, window_bounds = array<i64: 16, 32>}, {pipeline_mode = #tpu.pipeline_mode<synchronous>, transform_indices = @transform_1, window_bounds = array<i64: 32, 32>}, {pipeline_mode = #tpu.pipeline_mode<synchronous>, transform_indices = @transform_2, window_bounds = array<i64: 3, 32>}, {transform_indices = @transform_3, window_bounds = array<i64: 32, 128>}, {transform_indices = @transform_4, window_bounds = array<i64: 1, 128>}, {transform_indices = @transform_5, window_bounds = array<i64: 16, 128>}]} {
    %c0_i32 = arith.constant 0 : i32
    %0 = arith.cmpi eq, %arg1, %c0_i32 : i32
    %1 = arith.extui %0 : i1 to i32
    %c0_i32_0 = arith.constant 0 : i32
    %2 = arith.cmpi ne, %1, %c0_i32_0 : i32
    scf.if %2 {
      %c0_8 = arith.constant 0 : index
      %c0_9 = arith.constant 0 : index
      %10 = vector.load %arg2[%c0_8, %c0_9] : memref<16x32xf32, #tpu.memory_space<vmem>>, vector<16x32xf32>
      %c0_10 = arith.constant 0 : index
      %c0_11 = arith.constant 0 : index
      %11 = vector.load %arg3[%c0_10, %c0_11] : memref<32x32xf32, #tpu.memory_space<vmem>>, vector<32x32xf32>
      %cst_12 = arith.constant dense<0.000000e+00> : vector<16x32xf32>
      %12 = tpu.matmul %10, %11, %cst_12 {dimension_numbers = #tpu.dot_dimension_numbers<[1], [0], [0], [1], [0, 0, 1, 1], [], []>} : vector<16x32xf32>, vector<32x32xf32>, vector<16x32xf32> -> vector<16x32xf32>
      %c0_13 = arith.constant 0 : index
      %c0_14 = arith.constant 0 : index
      %13 = vector.load %arg4[%c0_13, %c0_14] : memref<3x32xf32, #tpu.memory_space<vmem>>, vector<3x32xf32>
      %14 = vector.extract_strided_slice %13 {offsets = [0, 0], sizes = [1, 32], strides = [1, 1]} : vector<3x32xf32> to vector<1x32xf32>
      %15 = vector.broadcast %14 : vector<1x32xf32> to vector<16x32xf32>
      %16 = arith.addf %12, %15 : vector<16x32xf32>
      %cst_15 = arith.constant 5.000000e-01 : f32
      %17 = vector.broadcast %cst_15 : f32 to vector<16x32xf32>
      %18 = arith.mulf %17, %16 : vector<16x32xf32>
      %cst_16 = arith.constant 0.707106769 : f32
      %19 = vector.broadcast %cst_16 : f32 to vector<16x32xf32>
      %20 = arith.mulf %16, %19 : vector<16x32xf32>
      %cst_17 = arith.constant 0.000000e+00 : f32
      %21 = vector.broadcast %cst_17 : f32 to vector<16x32xf32>
      %22 = arith.cmpf oge, %20, %21 : vector<16x32xf32>
      %cst_18 = arith.constant 1.000000e+00 : f32
      %cst_19 = arith.constant -1.000000e+00 : f32
      %23 = vector.broadcast %cst_18 : f32 to vector<16x32xf32>
      %24 = vector.broadcast %cst_19 : f32 to vector<16x32xf32>
      %25 = arith.select %22, %23, %24 : vector<16x32xi1>, vector<16x32xf32>
      %26 = math.absf %20 : vector<16x32xf32>
      %cst_20 = arith.constant 0.327591091 : f32
      %27 = vector.broadcast %cst_20 : f32 to vector<16x32xf32>
      %28 = arith.mulf %27, %26 : vector<16x32xf32>
      %cst_21 = arith.constant 1.000000e+00 : f32
      %29 = vector.broadcast %cst_21 : f32 to vector<16x32xf32>
      %30 = arith.addf %29, %28 : vector<16x32xf32>
      %31 = tpu.reciprocal %30 {approx = true} : vector<16x32xf32> -> vector<16x32xf32>
      %32 = arith.mulf %30, %31 : vector<16x32xf32>
      %cst_22 = arith.constant 2.000000e+00 : f32
      %33 = vector.broadcast %cst_22 : f32 to vector<16x32xf32>
      %34 = arith.subf %33, %32 : vector<16x32xf32>
      %35 = arith.mulf %31, %34 : vector<16x32xf32>
      %cst_23 = arith.constant 1.06140542 : f32
      %36 = vector.broadcast %cst_23 : f32 to vector<16x32xf32>
      %37 = arith.mulf %36, %35 : vector<16x32xf32>
      %cst_24 = arith.constant -1.45315206 : f32
      %38 = vector.broadcast %cst_24 : f32 to vector<16x32xf32>
      %39 = arith.addf %37, %38 : vector<16x32xf32>
      %40 = arith.mulf %39, %35 : vector<16x32xf32>
      %cst_25 = arith.constant 1.42141378 : f32
      %41 = vector.broadcast %cst_25 : f32 to vector<16x32xf32>
      %42 = arith.addf %40, %41 : vector<16x32xf32>
      %43 = arith.mulf %42, %35 : vector<16x32xf32>
      %cst_26 = arith.constant -0.284496725 : f32
      %44 = vector.broadcast %cst_26 : f32 to vector<16x32xf32>
      %45 = arith.addf %43, %44 : vector<16x32xf32>
      %46 = arith.mulf %45, %35 : vector<16x32xf32>
      %cst_27 = arith.constant 0.254829586 : f32
      %47 = vector.broadcast %cst_27 : f32 to vector<16x32xf32>
      %48 = arith.addf %46, %47 : vector<16x32xf32>
      %49 = arith.mulf %48, %35 : vector<16x32xf32>
      %cst_28 = arith.constant 0.000000e+00 : f32
      %50 = vector.broadcast %cst_28 : f32 to vector<16x32xf32>
      %51 = arith.subf %50, %26 : vector<16x32xf32>
      %52 = arith.mulf %51, %26 : vector<16x32xf32>
      %53 = math.exp %52 : vector<16x32xf32>
      %54 = arith.mulf %49, %53 : vector<16x32xf32>
      %cst_29 = arith.constant 1.000000e+00 : f32
      %55 = vector.broadcast %cst_29 : f32 to vector<16x32xf32>
      %56 = arith.subf %55, %54 : vector<16x32xf32>
      %57 = arith.mulf %25, %56 : vector<16x32xf32>
      %cst_30 = arith.constant 1.000000e+00 : f32
      %58 = vector.broadcast %cst_30 : f32 to vector<16x32xf32>
      %59 = arith.addf %58, %57 : vector<16x32xf32>
      %60 = arith.mulf %18, %59 : vector<16x32xf32>
      %cst_31 = arith.constant dense<0.000000e+00> : vector<16xf32>
      %61 = vector.multi_reduction <add>, %60, %cst_31 [1] : vector<16x32xf32> to vector<16xf32>
      %62 = vector.shape_cast %61 : vector<16xf32> to vector<16x1xf32>
      %cst_32 = arith.constant 3.200000e+01 : f32
      %63 = vector.broadcast %cst_32 : f32 to vector<16x1xf32>
      %64 = arith.divf %62, %63 : vector<16x1xf32>
      %65 = vector.broadcast %64 : vector<16x1xf32> to vector<16x32xf32>
      %66 = arith.subf %60, %65 : vector<16x32xf32>
      %67 = arith.mulf %66, %66 : vector<16x32xf32>
      %cst_33 = arith.constant dense<0.000000e+00> : vector<16xf32>
      %68 = vector.multi_reduction <add>, %67, %cst_33 [1] : vector<16x32xf32> to vector<16xf32>
      %69 = vector.shape_cast %68 : vector<16xf32> to vector<16x1xf32>
      %cst_34 = arith.constant 3.200000e+01 : f32
      %70 = vector.broadcast %cst_34 : f32 to vector<16x1xf32>
      %71 = arith.divf %69, %70 : vector<16x1xf32>
      %cst_35 = arith.constant 9.99999974E-6 : f32
      %72 = vector.broadcast %cst_35 : f32 to vector<16x1xf32>
      %73 = arith.addf %71, %72 : vector<16x1xf32>
      %74 = math.rsqrt %73 : vector<16x1xf32>
      %75 = vector.broadcast %74 : vector<16x1xf32> to vector<16x32xf32>
      %76 = arith.mulf %66, %75 : vector<16x32xf32>
      %77 = vector.extract_strided_slice %13 {offsets = [1, 0], sizes = [1, 32], strides = [1, 1]} : vector<3x32xf32> to vector<1x32xf32>
      %78 = vector.broadcast %77 : vector<1x32xf32> to vector<16x32xf32>
      %79 = arith.mulf %76, %78 : vector<16x32xf32>
      %80 = vector.extract_strided_slice %13 {offsets = [2, 0], sizes = [1, 32], strides = [1, 1]} : vector<3x32xf32> to vector<1x32xf32>
      %81 = vector.broadcast %80 : vector<1x32xf32> to vector<16x32xf32>
      %82 = arith.addf %79, %81 : vector<16x32xf32>
      %c0_36 = arith.constant 0 : index
      %c0_37 = arith.constant 0 : index
      %83 = vector.load %arg8[%c0_36, %c0_37] : memref<16x32xf32, #tpu.memory_space<vmem>>, vector<16x32xf32>
      tpu.vector_store %arg8[%c0_36, %c0_37], %82 {strides = array<i32>} : memref<16x32xf32, #tpu.memory_space<vmem>>, vector<16x32xf32>,
    } else {
    }
    %c0 = arith.constant 0 : index
    %c0_1 = arith.constant 0 : index
    %3 = vector.load %arg8[%c0, %c0_1] : memref<16x32xf32, #tpu.memory_space<vmem>>, vector<16x32xf32>
    %c0_2 = arith.constant 0 : index
    %c0_3 = arith.constant 0 : index
    %4 = vector.load %arg5[%c0_2, %c0_3] : memref<32x128xf32, #tpu.memory_space<vmem>>, vector<32x128xf32>
    %cst = arith.constant dense<0.000000e+00> : vector<16x128xf32>
    %5 = tpu.matmul %3, %4, %cst {dimension_numbers = #tpu.dot_dimension_numbers<[1], [0], [0], [1], [0, 0, 1, 1], [], []>} : vector<16x32xf32>, vector<32x128xf32>, vector<16x128xf32> -> vector<16x128xf32>
    %c0_4 = arith.constant 0 : index
    %c0_5 = arith.constant 0 : index
    %6 = vector.load %arg6[%c0_4, %c0_5] : memref<1x128xf32, #tpu.memory_space<vmem>>, vector<1x128xf32>
    %7 = vector.broadcast %6 : vector<1x128xf32> to vector<16x128xf32>
    %8 = arith.addf %5, %7 : vector<16x128xf32>
    %c0_6 = arith.constant 0 : index
    %c0_7 = arith.constant 0 : index
    %9 = vector.load %arg7[%c0_6, %c0_7] : memref<16x128xf32, #tpu.memory_space<vmem>>, vector<16x128xf32>
    tpu.vector_store %arg7[%c0_6, %c0_7], %8 {strides = array<i32>} : memref<16x128xf32, #tpu.memory_space<vmem>>, vector<16x128xf32>,
    return
  }
  func.func @transform_0(%arg0: i32, %arg1: i32) -> (i32, i32) {
    %c0_i32 = arith.constant 0 : i32
    %c0_i32_0 = arith.constant 0 : i32
    return %arg0, %c0_i32 : i32, i32
  }
  func.func @transform_1(%arg0: i32, %arg1: i32) -> (i32, i32) {
    %c0_i32 = arith.constant 0 : i32
    %c0_i32_0 = arith.constant 0 : i32
    %c0_i32_1 = arith.constant 0 : i32
    return %c0_i32, %c0_i32_0 : i32, i32
  }
  func.func @transform_2(%arg0: i32, %arg1: i32) -> (i32, i32) {
    %c0_i32 = arith.constant 0 : i32
    %c0_i32_0 = arith.constant 0 : i32
    %c0_i32_1 = arith.constant 0 : i32
    return %c0_i32, %c0_i32_0 : i32, i32
  }
  func.func @transform_3(%arg0: i32, %arg1: i32) -> (i32, i32) {
    %c0_i32 = arith.constant 0 : i32
    %c0_i32_0 = arith.constant 0 : i32
    return %c0_i32, %arg1 : i32, i32
  }
  func.func @transform_4(%arg0: i32, %arg1: i32) -> (i32, i32) {
    %c0_i32 = arith.constant 0 : i32
    %c0_i32_0 = arith.constant 0 : i32
    return %c0_i32, %arg1 : i32, i32
  }
  func.func @transform_5(%arg0: i32, %arg1: i32) -> (i32, i32) {
    %c0_i32 = arith.constant 0 : i32
    return %arg0, %arg1 : i32, i32
  }
}

module attributes {stable_mosaic.version = 11 : i64} {
  func.func @_mph_kernel(%arg0: i32, %arg1: i32, %arg2: memref<16x32xf32, #tpu.memory_space<vmem>>, %arg3: memref<32x32xf32, #tpu.memory_space<vmem>>, %arg4: memref<3x32xf32, #tpu.memory_space<vmem>>, %arg5: memref<32x128xf32, #tpu.memory_space<vmem>>, %arg6: memref<1x128xf32, #tpu.memory_space<vmem>>, %arg7: memref<16x128xf32, #tpu.memory_space<vmem>>, %arg8: memref<16x32xf32, #tpu.memory_space<vmem>>) attributes {dimension_semantics = [#tpu.dimension_semantics<parallel>, #tpu.dimension_semantics<arbitrary>], iteration_bounds = array<i64: 1, 1>, scalar_prefetch = 0 : i64, scratch_operands = 1 : i64, tpu.core_type = #tpu.core_type<tc>, window_params = [{transform_indices = @transform_0, window_bounds = array<i64: 16, 32>}, {pipeline_mode = #tpu.pipeline_mode<synchronous>, transform_indices = @transform_1, window_bounds = array<i64: 32, 32>}, {pipeline_mode = #tpu.pipeline_mode<synchronous>, transform_indices = @transform_2, window_bounds = array<i64: 3, 32>}, {transform_indices = @transform_3, window_bounds = array<i64: 32, 128>}, {transform_indices = @transform_4, window_bounds = array<i64: 1, 128>}, {transform_indices = @transform_5, window_bounds = array<i64: 16, 128>}]} {
    %c0_i32 = arith.constant 0 : i32
    %0 = arith.cmpi eq, %arg1, %c0_i32 : i32
    %1 = arith.extui %0 : i1 to i32
    %c0_i32_0 = arith.constant 0 : i32
    %2 = arith.cmpi ne, %1, %c0_i32_0 : i32
    scf.if %2 {
      %c0_8 = arith.constant 0 : index
      %c0_9 = arith.constant 0 : index
      %10 = vector.load %arg2[%c0_8, %c0_9] : memref<16x32xf32, #tpu.memory_space<vmem>>, vector<16x32xf32>
      %c0_10 = arith.constant 0 : index
      %c0_11 = arith.constant 0 : index
      %11 = vector.load %arg3[%c0_10, %c0_11] : memref<32x32xf32, #tpu.memory_space<vmem>>, vector<32x32xf32>
      %cst_12 = arith.constant dense<0.000000e+00> : vector<16x32xf32>
      %12 = tpu.matmul %10, %11, %cst_12 {dimension_numbers = #tpu.dot_dimension_numbers<[1], [0], [0], [1], [0, 0, 1, 1], [], []>} : vector<16x32xf32>, vector<32x32xf32>, vector<16x32xf32> -> vector<16x32xf32>
      %c0_13 = arith.constant 0 : index
      %c0_14 = arith.constant 0 : index
      %13 = vector.load %arg4[%c0_13, %c0_14] : memref<3x32xf32, #tpu.memory_space<vmem>>, vector<3x32xf32>
      %14 = vector.extract_strided_slice %13 {offsets = [0, 0], sizes = [1, 32], strides = [1, 1]} : vector<3x32xf32> to vector<1x32xf32>
      %15 = vector.broadcast %14 : vector<1x32xf32> to vector<16x32xf32>
      %16 = arith.addf %12, %15 : vector<16x32xf32>
      %cst_15 = arith.constant 5.000000e-01 : f32
      %17 = vector.broadcast %cst_15 : f32 to vector<16x32xf32>
      %18 = arith.mulf %17, %16 : vector<16x32xf32>
      %cst_16 = arith.constant 0.707106769 : f32
      %19 = vector.broadcast %cst_16 : f32 to vector<16x32xf32>
      %20 = arith.mulf %16, %19 : vector<16x32xf32>
      %cst_17 = arith.constant 0.000000e+00 : f32
      %21 = vector.broadcast %cst_17 : f32 to vector<16x32xf32>
      %22 = arith.cmpf oge, %20, %21 : vector<16x32xf32>
      %cst_18 = arith.constant 1.000000e+00 : f32
      %cst_19 = arith.constant -1.000000e+00 : f32
      %23 = vector.broadcast %cst_18 : f32 to vector<16x32xf32>
      %24 = vector.broadcast %cst_19 : f32 to vector<16x32xf32>
      %25 = arith.select %22, %23, %24 : vector<16x32xi1>, vector<16x32xf32>
      %26 = math.absf %20 : vector<16x32xf32>
      %cst_20 = arith.constant 0.327591091 : f32
      %27 = vector.broadcast %cst_20 : f32 to vector<16x32xf32>
      %28 = arith.mulf %27, %26 : vector<16x32xf32>
      %cst_21 = arith.constant 1.000000e+00 : f32
      %29 = vector.broadcast %cst_21 : f32 to vector<16x32xf32>
      %30 = arith.addf %29, %28 : vector<16x32xf32>
      %31 = tpu.reciprocal %30 {approx = true} : vector<16x32xf32> -> vector<16x32xf32>
      %32 = arith.mulf %30, %31 : vector<16x32xf32>
      %cst_22 = arith.constant 2.000000e+00 : f32
      %33 = vector.broadcast %cst_22 : f32 to vector<16x32xf32>
      %34 = arith.subf %33, %32 : vector<16x32xf32>
      %35 = arith.mulf %31, %34 : vector<16x32xf32>
      %cst_23 = arith.constant 1.06140542 : f32
      %36 = vector.broadcast %cst_23 : f32 to vector<16x32xf32>
      %37 = arith.mulf %36, %35 : vector<16x32xf32>
      %cst_24 = arith.constant -1.45315206 : f32
      %38 = vector.broadcast %cst_24 : f32 to vector<16x32xf32>
      %39 = arith.addf %37, %38 : vector<16x32xf32>
      %40 = arith.mulf %39, %35 : vector<16x32xf32>
      %cst_25 = arith.constant 1.42141378 : f32
      %41 = vector.broadcast %cst_25 : f32 to vector<16x32xf32>
      %42 = arith.addf %40, %41 : vector<16x32xf32>
      %43 = arith.mulf %42, %35 : vector<16x32xf32>
      %cst_26 = arith.constant -0.284496725 : f32
      %44 = vector.broadcast %cst_26 : f32 to vector<16x32xf32>
      %45 = arith.addf %43, %44 : vector<16x32xf32>
      %46 = arith.mulf %45, %35 : vector<16x32xf32>
      %cst_27 = arith.constant 0.254829586 : f32
      %47 = vector.broadcast %cst_27 : f32 to vector<16x32xf32>
      %48 = arith.addf %46, %47 : vector<16x32xf32>
      %49 = arith.mulf %48, %35 : vector<16x32xf32>
      %cst_28 = arith.constant 0.000000e+00 : f32
      %50 = vector.broadcast %cst_28 : f32 to vector<16x32xf32>
      %51 = arith.subf %50, %26 : vector<16x32xf32>
      %52 = arith.mulf %51, %26 : vector<16x32xf32>
      %53 = math.exp %52 : vector<16x32xf32>
      %54 = arith.mulf %49, %53 : vector<16x32xf32>
      %cst_29 = arith.constant 1.000000e+00 : f32
      %55 = vector.broadcast %cst_29 : f32 to vector<16x32xf32>
      %56 = arith.subf %55, %54 : vector<16x32xf32>
      %57 = arith.mulf %25, %56 : vector<16x32xf32>
      %cst_30 = arith.constant 1.000000e+00 : f32
      %58 = vector.broadcast %cst_30 : f32 to vector<16x32xf32>
      %59 = arith.addf %58, %57 : vector<16x32xf32>
      %60 = arith.mulf %18, %59 : vector<16x32xf32>
      %cst_31 = arith.constant dense<0.000000e+00> : vector<16xf32>
      %61 = vector.multi_reduction <add>, %60, %cst_31 [1] : vector<16x32xf32> to vector<16xf32>
      %62 = vector.shape_cast %61 : vector<16xf32> to vector<16x1xf32>
      %cst_32 = arith.constant 3.200000e+01 : f32
      %63 = vector.broadcast %cst_32 : f32 to vector<16x1xf32>
      %64 = arith.divf %62, %63 : vector<16x1xf32>
      %65 = vector.broadcast %64 : vector<16x1xf32> to vector<16x32xf32>
      %66 = arith.subf %60, %65 : vector<16x32xf32>
      %67 = arith.mulf %66, %66 : vector<16x32xf32>
      %cst_33 = arith.constant dense<0.000000e+00> : vector<16xf32>
      %68 = vector.multi_reduction <add>, %67, %cst_33 [1] : vector<16x32xf32> to vector<16xf32>
      %69 = vector.shape_cast %68 : vector<16xf32> to vector<16x1xf32>
      %cst_34 = arith.constant 3.200000e+01 : f32
      %70 = vector.broadcast %cst_34 : f32 to vector<16x1xf32>
      %71 = arith.divf %69, %70 : vector<16x1xf32>
      %cst_35 = arith.constant 9.99999974E-6 : f32
      %72 = vector.broadcast %cst_35 : f32 to vector<16x1xf32>
      %73 = arith.addf %71, %72 : vector<16x1xf32>
      %74 = math.rsqrt %73 : vector<16x1xf32>
      %75 = vector.broadcast %74 : vector<16x1xf32> to vector<16x32xf32>
      %76 = arith.mulf %66, %75 : vector<16x32xf32>
      %77 = vector.extract_strided_slice %13 {offsets = [1, 0], sizes = [1, 32], strides = [1, 1]} : vector<3x32xf32> to vector<1x32xf32>
      %78 = vector.broadcast %77 : vector<1x32xf32> to vector<16x32xf32>
      %79 = arith.mulf %76, %78 : vector<16x32xf32>
      %80 = vector.extract_strided_slice %13 {offsets = [2, 0], sizes = [1, 32], strides = [1, 1]} : vector<3x32xf32> to vector<1x32xf32>
      %81 = vector.broadcast %80 : vector<1x32xf32> to vector<16x32xf32>
      %82 = arith.addf %79, %81 : vector<16x32xf32>
      %c0_36 = arith.constant 0 : index
      %c0_37 = arith.constant 0 : index
      %83 = vector.load %arg8[%c0_36, %c0_37] : memref<16x32xf32, #tpu.memory_space<vmem>>, vector<16x32xf32>
      tpu.vector_store %arg8[%c0_36, %c0_37], %82 {strides = array<i32>} : memref<16x32xf32, #tpu.memory_space<vmem>>, vector<16x32xf32>,
    } else {
    }
    %c0 = arith.constant 0 : index
    %c0_1 = arith.constant 0 : index
    %3 = vector.load %arg8[%c0, %c0_1] : memref<16x32xf32, #tpu.memory_space<vmem>>, vector<16x32xf32>
    %c0_2 = arith.constant 0 : index
    %c0_3 = arith.constant 0 : index
    %4 = vector.load %arg5[%c0_2, %c0_3] : memref<32x128xf32, #tpu.memory_space<vmem>>, vector<32x128xf32>
    %cst = arith.constant dense<0.000000e+00> : vector<16x128xf32>
    %5 = tpu.matmul %3, %4, %cst {dimension_numbers = #tpu.dot_dimension_numbers<[1], [0], [0], [1], [0, 0, 1, 1], [], []>} : vector<16x32xf32>, vector<32x128xf32>, vector<16x128xf32> -> vector<16x128xf32>
    %c0_4 = arith.constant 0 : index
    %c0_5 = arith.constant 0 : index
    %6 = vector.load %arg6[%c0_4, %c0_5] : memref<1x128xf32, #tpu.memory_space<vmem>>, vector<1x128xf32>
    %7 = vector.broadcast %6 : vector<1x128xf32> to vector<16x128xf32>
    %8 = arith.addf %5, %7 : vector<16x128xf32>
    %c0_6 = arith.constant 0 : index
    %c0_7 = arith.constant 0 : index
    %9 = vector.load %arg7[%c0_6, %c0_7] : memref<16x128xf32, #tpu.memory_space<vmem>>, vector<16x128xf32>
    tpu.vector_store %arg7[%c0_6, %c0_7], %8 {strides = array<i32>} : memref<16x128xf32, #tpu.memory_space<vmem>>, vector<16x128xf32>,
    return
  }
  func.func @transform_0(%arg0: i32, %arg1: i32) -> (i32, i32) {
    %c0_i32 = arith.constant 0 : i32
    %c0_i32_0 = arith.constant 0 : i32
    return %arg0, %c0_i32 : i32, i32
  }
  func.func @transform_1(%arg0: i32, %arg1: i32) -> (i32, i32) {
    %c0_i32 = arith.constant 0 : i32
    %c0_i32_0 = arith.constant 0 : i32
    %c0_i32_1 = arith.constant 0 : i32
    return %c0_i32, %c0_i32_0 : i32, i32
  }
  func.func @transform_2(%arg0: i32, %arg1: i32) -> (i32, i32) {
    %c0_i32 = arith.constant 0 : i32
    %c0_i32_0 = arith.constant 0 : i32
    %c0_i32_1 = arith.constant 0 : i32
    return %c0_i32, %c0_i32_0 : i32, i32
  }
  func.func @transform_3(%arg0: i32, %arg1: i32) -> (i32, i32) {
    %c0_i32 = arith.constant 0 : i32
    %c0_i32_0 = arith.constant 0 : i32
    return %c0_i32, %arg1 : i32, i32
  }
  func.func @transform_4(%arg0: i32, %arg1: i32) -> (i32, i32) {
    %c0_i32 = arith.constant 0 : i32
    %c0_i32_0 = arith.constant 0 : i32
    return %c0_i32, %arg1 : i32, i32
  }
  func.func @transform_5(%arg0: i32, %arg1: i32) -> (i32, i32) {
    %c0_i32 = arith.constant 0 : i32
    return %arg0, %arg1 : i32, i32
  }
}

</mosaic_0001>

<bundles_post_ra>
// kernel: tpu_custom_call.1
= control target key start
LH: loop header
LB: loop body
LE: loop exit
PB: predicated region body
PF: predicated region fallthrough
CT: control target
= control target key end

     0   :  { %10 = vsyncpa [#allocation4], 0  ;;  %s556_s0 = inlined_call_operand.hbm [shape: f32[16,32], index: 0, kind: input, shape index: {}]   ;;  %s557_s1 = inlined_call_operand.hbm [shape: f32[32,32], index: 1, kind: input, shape index: {}]   ;;  %s558_s2 = inlined_call_operand.hbm [shape: f32[3,32], index: 2, kind: input, shape index: {}]   ;;  %s559_s3 = inlined_call_operand.hbm [shape: f32[32,128], index: 3, kind: input, shape index: {}]   ;;  %s560_s4 = inlined_call_operand.vmem [shape: f32[1,128], index: 4, kind: input, shape index: {}]   ;;  %s561_s5 = inlined_call_operand.hbm [shape: f32[16,128], index: 5, kind: output, shape index: {}]  }
   0x1   :  { %11 = vsyncpa [#allocation7], 0 }
   0x2   :  { %12 = vsyncpa [#allocation10], 0 }
   0x3   :  { %13 = vsyncpa [#allocation5], 0  ;;  %s31_s20 = sshll.u32 %s557_s1, 4  ;;  %s468_s21 = smov [#allocation6]   ;;  %s32_s20 = int_to_ptr.hbm [resolvable:$true] %s31_s20 }
   0x4   :  { %s33_s22 = sshll.u32 %s468_s21, 4  ;;  %s18_s25 = sshll.u32 %s556_s0, 4  ;;  %s34_s22 = int_to_ptr.vmem [resolvable:$true] %s33_s22  ;;  %s19_s25 = int_to_ptr.hbm [resolvable:$true] %s18_s25 }
   0x5   :  { %s469_s26 = smov 128   ;;  %s470_s27 = smov 8  }
   0x6   :  { %39 = dma.hbm_to_vmem [thread:$0]  %s32_s20, 512, %s34_s22, [#allocation7], %s469_s26, %s469_s26, %s470_s27  }
   0x7   :  { %s471_s28 = smov [#allocation3]   ;;  %s45_s1 = sshll.u32 %s558_s2, 4  ;;  %s46_s1 = int_to_ptr.hbm [resolvable:$true] %s45_s1 }
   0x8   :  { %s20_s29 = sshll.u32 %s471_s28, 4  ;;  %s55_s8 = sshll.u32 %s559_s3, 4  ;;  %s21_s29 = int_to_ptr.vmem [resolvable:$true] %s20_s29  ;;  %s56_s8 = int_to_ptr.hbm [resolvable:$true] %s55_s8 }
   0x9   :  { %26 = dma.hbm_to_vmem [thread:$0]  %s19_s25, 256, %s21_s29, [#allocation4], %s469_s26, %s469_s26, %s470_s27  }
   0xa   :  { %s472_s9 = smov [#allocation8]   ;;  %s473_s11 = smov [#allocation9]  }
   0xb   :  { %s47_s10 = sshll.u32 %s472_s9, 4  ;;  %s57_s12 = sshll.u32 %s473_s11, 4  ;;  %s48_s10 = int_to_ptr.vmem [resolvable:$true] %s47_s10  ;;  %s58_s12 = int_to_ptr.vmem [resolvable:$true] %s57_s12 }
   0xc   :  { %50 = dma.hbm_to_vmem [thread:$0]  %s46_s1, 64, %s48_s10, [#allocation7]  }
   0xd   :  { %63 = dma.hbm_to_vmem [thread:$0]  %s56_s8, 512, %s58_s12, [#allocation10], %s469_s26, %s469_s26, %s470_s27  }
   0xe   :  { %460 = dma.done.wait [#allocation4], 256  }
   0xf   :  { %461 = vsyncadd [#allocation4], 4294967040 }
  0x10   :  { %462 = dma.done.wait [#allocation7], 576  }
  0x11   :  { %463 = vsyncadd [#allocation7], 4294966720 }
  0x12   :  { %464 = dma.done.wait [#allocation10], 512  }
  0x13   :  { %465 = vsyncadd [#allocation10], 4294966784  ;;  %v91_v0 = vld [vmem:[#allocation6 + $0x18] sm:$0xff]  ;;  %v90_v1 = vld [vmem:[#allocation6 + $0x10] sm:$0xff]  ;;  %vm94_vm0 = vcmask 261120   ;;  %v474_v58 = vmov -1.0  }
  0x14   :  { %113 = vmatpush.msra.mxu0 %v91_v0  ;;  %308 = vmatpush.msra.mxu2 %v91_v0  ;;  %v89_v2 = vld [vmem:[#allocation6 + $0x8] sm:$0xff]  ;;  %v88_v3 = vld [vmem:[#allocation6] sm:$0xff]  ;;  %v86_v4 = vld [vmem:[#allocation3] sm:$0xff]  ;;  %s476_s13 = smov [#allocation11]   ;;  %s289_s17 = sshll.u32 %s561_s5, 4  ;;  %s290_s17 = int_to_ptr.hbm [resolvable:$true] %s289_s17 }
  0x15   :  { %v87_v5 = vld [vmem:[#allocation3 + $0x8] sm:$0xff]  ;;  %v530_v6 = vld [vmem:[#allocation8] sm:$0x7]  ;;  %s287_s14 = sshll.u32 %s476_s13, 4  ;;  %s288_s14 = int_to_ptr.vmem [resolvable:$true] %s287_s14 }
  0x16   :  { %114 = vmatpush.msra.mxu0 %v90_v1  ;;  %309 = vmatpush.msra.mxu2 %v90_v1  ;;  %v93_v7 = vperm.slane %v530_v6, 0 }
  0x18   :  { %115 = vmatpush.msra.mxu0 %v89_v2  ;;  %310 = vmatpush.msra.mxu2 %v89_v2 }
  0x1a   :  { %116 = vmatpush.msra.mxu0 %v88_v3  ;;  %311 = vmatpush.msra.mxu2 %v88_v3 }
  0x1b   :  { %304 = vmatmul.msk.f32.vlgmr.msra.gmra.mxu0 %vm94_vm0, %v86_v4  ;;  %305 = vmatmul.msk.f32.vlgmr.msra.gmra.mxu2 %vm94_vm0, %v87_v5 }
  0x98   :  { %v118_v8 = vpop.f32.mrf.mxu0 }
  0x99   :  { %v533_v9 = vadd.f32 %v118_v8, %v93_v7  ;;  %v475_v8 = vmov 32.0  }
  0x9b   :  { %v126_v10 = vmul.f32 0.70710677, %v533_v9  ;;  %v124_v4 = vmul.f32 0.5, %v533_v9 }
  0x9d   :  { %v132_v11 = vand.u32 2147483647, %v126_v10  ;;  %vm128_vm2 = vcmp.ge.f32.partialorder %v126_v10, 0.0 }
  0x9e   :  { %v121_v12 = vpop.f32.mrf.mxu2  ;;  %v130_v61 = vsel %vm128_vm2, 1.0, %v474_v58 }
  0x9f   :  { %v134_v13 = vmul.f32 0.3275911, %v132_v11  ;;  %v122_v14 = vadd.f32 %v121_v12, %v93_v7  ;;  %v164_v29 = vsub.f32 0.0, %v132_v11 }
  0xa1   :  { %v136_v15 = vadd.f32 1.0, %v134_v13  ;;  %v127_v16 = vmul.f32 0.70710677, %v122_v14  ;;  %v166_v35 = vmul.f32 %v164_v29, %v132_v11  ;;  %v125_v62 = vmul.f32 0.5, %v122_v14  ;;  %v244_v29 = vld [vmem:[#allocation9 + $0x8] sm:$0xff] }
  0xa3   :  { %326 = vrcp.f32 %v136_v15  ;;  %v133_v17 = vand.u32 2147483647, %v127_v16  ;;  %v168_v41 = vmul.f32 1.442695, %v166_v35  ;;  %vm129_vm1 = vcmp.ge.f32.partialorder %v127_v16, 0.0 }
  0xa4   :  { %v131_v59 = vsel %vm129_vm1, 1.0, %v474_v58  ;;  %v325_v58 = vld [vmem:[%s560_s4] ss:$0 sm:$0xff] }
  0xa5   :  { %v135_v18 = vmul.f32 0.3275911, %v133_v17  ;;  %v165_v32 = vsub.f32 0.0, %v133_v17 }
  0xa7   :  { %v137_v19 = vadd.f32 1.0, %v135_v18  ;;  %v167_v38 = vmul.f32 %v165_v32, %v133_v17 }
  0xa9   :  { %v327_v20 = vpop.eup %326  ;;  %328 = vrcp.f32 %v137_v19  ;;  %v170_v44 = vmul.f32 1.442695, %v167_v38 }
  0xaa   :  { %v140_v21 = vmul.f32 %v327_v20, %v136_v15  ;;  %330 = vpow2.f32 %v168_v41 }
  0xab   :  { %332 = vpow2.f32 %v170_v44 }
  0xac   :  { %v142_v22 = vsub.f32 2.0, %v140_v21  ;;  %334 = vrcp.f32 %v475_v8 }
  0xae   :  { %v144_v23 = vmul.f32 %v327_v20, %v142_v22 }
  0xaf   :  { %v329_v24 = vpop.eup %328 }
  0xb0   :  { %v141_v25 = vmul.f32 %v329_v24, %v137_v19  ;;  %v146_v26 = vmul.f32 1.0614054, %v144_v23  ;;  %v331_v51 = vpop.eup %330 }
  0xb1   :  { %v333_v54 = vpop.eup %332 }
  0xb2   :  { %v143_v27 = vsub.f32 2.0, %v141_v25  ;;  %v148_v28 = vadd.f32 -1.4531521, %v146_v26  ;;  %v335_v10 = vpop.eup %334  ;;  %v246_v25 = vld [vmem:[#allocation9 + $0x18] sm:$0xff]  ;;  %v245_v26 = vld [vmem:[#allocation9 + $0x10] sm:$0xff] }
  0xb3   :  { %v189_v11 = vmul.f32 32.0, %v335_v10  ;;  %vm193_vm3 = vweird.f32 %v335_v10  ;;  %312 = vmatpush.msra.mxu3 %v246_v25  ;;  %270 = vmatpush.msra.mxu1 %v246_v25 }
  0xb4   :  { %v145_v30 = vmul.f32 %v329_v24, %v143_v27  ;;  %v150_v31 = vmul.f32 %v148_v28, %v144_v23 }
  0xb5   :  { %v190_v12 = vsub.f32 1.0, %v189_v11  ;;  %313 = vmatpush.msra.mxu3 %v245_v26  ;;  %271 = vmatpush.msra.mxu1 %v245_v26 }
  0xb6   :  { %v147_v33 = vmul.f32 1.0614054, %v145_v30  ;;  %v152_v34 = vadd.f32 1.4214138, %v150_v31  ;;  %v243_v31 = vld [vmem:[#allocation9] sm:$0xff] }
  0xb7   :  { %v191_v13 = vmul.f32 %v335_v10, %v190_v12  ;;  %314 = vmatpush.msra.mxu3 %v244_v29  ;;  %272 = vmatpush.msra.mxu1 %v244_v29 }
  0xb8   :  { %v149_v36 = vadd.f32 -1.4531521, %v147_v33  ;;  %v154_v37 = vmul.f32 %v152_v34, %v144_v23 }
  0xb9   :  { %v192_v14 = vadd.f32 %v335_v10, %v191_v13  ;;  %315 = vmatpush.msra.mxu3 %v243_v31  ;;  %273 = vmatpush.msra.mxu1 %v243_v31 }
  0xba   :  { %v151_v39 = vmul.f32 %v149_v36, %v145_v30  ;;  %v156_v40 = vadd.f32 -0.28449672, %v154_v37 }
  0xbb   :  { %v194_v15 = vsel %vm193_vm3, %v335_v10, %v192_v14 }
  0xbc   :  { %v153_v42 = vadd.f32 1.4214138, %v151_v39  ;;  %v158_v43 = vmul.f32 %v156_v40, %v144_v23 }
  0xbe   :  { %v155_v45 = vmul.f32 %v153_v42, %v145_v30  ;;  %v160_v46 = vadd.f32 0.2548296, %v158_v43  ;;  %v233_v43 = vperm.slane %v530_v6, 1 }
  0xc0   :  { %v157_v47 = vadd.f32 -0.28449672, %v155_v45  ;;  %v162_v49 = vmul.f32 %v160_v46, %v144_v23  ;;  %v236_v46 = vperm.slane %v530_v6, 2 }
  0xc2   :  { %v159_v48 = vmul.f32 %v157_v47, %v145_v30  ;;  %v172_v53 = vmul.f32 %v331_v51, %v162_v49 }
  0xc4   :  { %v161_v50 = vadd.f32 0.2548296, %v159_v48  ;;  %v174_v57 = vsub.f32 1.0, %v172_v53 }
  0xc6   :  { %v163_v52 = vmul.f32 %v161_v50, %v145_v30  ;;  %v176_v0 = vmul.f32 %v174_v57, %v130_v61 }
  0xc8   :  { %v173_v55 = vmul.f32 %v333_v54, %v163_v52  ;;  %v178_v3 = vadd.f32 1.0, %v176_v0 }
  0xca   :  { %v175_v56 = vsub.f32 1.0, %v173_v55  ;;  %v180_v5 = vmul.f32 %v178_v3, %v124_v4 }
  0xcc   :  { %v177_v60 = vmul.f32 %v175_v56, %v131_v59  ;;  %v182_v7 = vsel %vm94_vm0, %v180_v5, 0.0 }
  0xce   :  { %v179_v63 = vadd.f32 1.0, %v177_v60 }
  0xd0   :  { %v181_v1 = vmul.f32 %v179_v63, %v125_v62 }
  0xd2   :  { %v185_v2 = vsel %vm94_vm0, %v181_v1, 0.0 }
  0xd3   :  { %186 = vadd.xlane.f32.xlu0 %v185_v2 }
  0xdb   :  { %183 = vadd.xlane.f32.xlu0 %v182_v7 }
 0x146   :  { %v187_v16 = vpop.xlane.xlu0 %186 }
 0x147   :  { %v196_v17 = vmul.f32 %v194_v15, %v187_v16 }
 0x149   :  { %v198_v18 = vsub.f32 %v181_v1, %v196_v17 }
 0x14b   :  { %v200_v19 = vmul.f32 %v198_v18, %v198_v18 }
 0x14d   :  { %v204_v20 = vsel %vm94_vm0, %v200_v19, 0.0 }
 0x14e   :  { %205 = vadd.xlane.f32.xlu1 %v204_v20  ;;  %v184_v9 = vpop.xlane.xlu0 %183 }
 0x14f   :  { %v195_v21 = vmul.f32 %v194_v15, %v184_v9 }
 0x151   :  { %v197_v22 = vsub.f32 %v180_v5, %v195_v21 }
 0x153   :  { %v199_v23 = vmul.f32 %v197_v22, %v197_v22 }
 0x155   :  { %v201_v24 = vsel %vm94_vm0, %v199_v23, 0.0 }
 0x156   :  { %202 = vadd.xlane.f32.xlu1 %v201_v24 }
 0x1c1   :  { %v206_v27 = vpop.xlane.xlu1 %205 }
 0x1c2   :  { %v208_v28 = vmul.f32 %v206_v27, %v194_v15 }
 0x1c4   :  { %v210_v30 = vadd.f32 1e-05, %v208_v28 }
 0x1c6   :  { %336 = vrsqrt.f32 %v210_v30  ;;  %vm227_vm5 = vweird.f32 %v210_v30 }
 0x1c9   :  { %v203_v32 = vpop.xlane.xlu1 %202 }
 0x1ca   :  { %v207_v33 = vmul.f32 %v203_v32, %v194_v15 }
 0x1cc   :  { %v337_v34 = vpop.eup %336  ;;  %v209_v35 = vadd.f32 1e-05, %v207_v33 }
 0x1cd   :  { %v222_v36 = vmul.f32 %v337_v34, %v210_v30  ;;  %vm228_vm4 = vweird.f32 %v337_v34 }
 0x1ce   :  { %338 = vrsqrt.f32 %v209_v35  ;;  %vm229_vm6 = vmor %vm227_vm5, %vm228_vm4  ;;  %vm217_vm8 = vweird.f32 %v209_v35 }
 0x1cf   :  { %v223_v37 = vmul.f32 %v337_v34, %v222_v36 }
 0x1d1   :  { %v224_v38 = vmul.f32 0.5, %v223_v37 }
 0x1d3   :  { %v225_v39 = vsub.f32 1.5, %v224_v38 }
 0x1d4   :  { %v339_v40 = vpop.eup %338 }
 0x1d5   :  { %v226_v41 = vmul.f32 %v337_v34, %v225_v39  ;;  %v212_v42 = vmul.f32 %v339_v40, %v209_v35  ;;  %vm218_vm7 = vweird.f32 %v339_v40 }
 0x1d6   :  { %vm219_vm9 = vmor %vm217_vm8, %vm218_vm7 }
 0x1d7   :  { %v230_v44 = vsel %vm229_vm6, %v337_v34, %v226_v41  ;;  %v213_v45 = vmul.f32 %v339_v40, %v212_v42 }
 0x1d8   :  { %v232_v47 = vmul.f32 %v230_v44, %v198_v18 }
 0x1d9   :  { %v214_v48 = vmul.f32 0.5, %v213_v45 }
 0x1da   :  { %v235_v49 = vmul.f32 %v233_v43, %v232_v47 }
 0x1db   :  { %v215_v50 = vsub.f32 1.5, %v214_v48 }
 0x1dc   :  { %v238_v51 = vadd.f32 %v236_v46, %v235_v49 }
 0x1dd   :  { %v216_v52 = vmul.f32 %v339_v40, %v215_v50 }
 0x1de   :  { %240 = vst.msk [vmem:[#allocation2 + $0x8] sm:$0xff] %vm94_vm0, %v238_v51 }
 0x1df   :  { %v220_v53 = vsel %vm219_vm9, %v339_v40, %v216_v52 }
 0x1e0   :  { %v231_v54 = vmul.f32 %v220_v53, %v197_v22 }
 0x1e2   :  { %v234_v55 = vmul.f32 %v233_v43, %v231_v54 }
 0x1e4   :  { %v237_v56 = vadd.f32 %v236_v46, %v234_v55 }
 0x1e5   :  { %v242_v57 = vld [vmem:[#allocation2 + $0x8] sm:$0xff] }
 0x1e6   :  { %239 = vst.msk [vmem:[#allocation2] sm:$0xff] %vm94_vm0, %v237_v56  ;;  %307 = vmatmul.msk.f32.vlgmr.msra.gmra.mxu3 %vm94_vm0, %v242_v57 }
 0x1ed   :  { %v241_v6 = vld [vmem:[#allocation2] sm:$0xff] }
 0x1ee   :  { %306 = vmatmul.msk.f32.vlgmr.msra.gmra.mxu1 %vm94_vm0, %v241_v6 }
 0x269   :  { %v278_v59 = vpop.f32.mrf.mxu3 }
 0x26a   :  { %v279_v60 = vadd.f32 %v325_v58, %v278_v59 }
 0x26b   :  { %v275_v61 = vpop.f32.mrf.mxu1 }
 0x26c   :  { %282 = vst [vmem:[#allocation11 + $0x8] sm:$0xff] %v279_v60  ;;  %v276_v62 = vadd.f32 %v325_v58, %v275_v61 }
 0x26e   :  { %281 = vst [vmem:[#allocation11] sm:$0xff] %v276_v62 }
 0x26f   :  { %295 = dma.vmem_to_hbm [thread:$0]  %s288_s14, 256, %s290_s17, [#allocation5], %s469_s26, %s469_s26, %s470_s27  }
 0x270   :  { %466 = dma.done.wait [#allocation5], 256  }
 0x271   :  { %467 = vsyncadd [#allocation5], 4294967040 }
 0x272   :  { %300 = vsyncpa [#allocation4], 1 }
 0x273   :  { %301 = vsyncpa [#allocation7], 1 }
 0x274   :  { %302 = vsyncpa [#allocation10], 1 }
 0x275   :  { %303 = vsyncpa [#allocation5], 1 }

// kernel: tpu_custom_call.1
= control target key start
LH: loop header
LB: loop body
LE: loop exit
PB: predicated region body
PF: predicated region fallthrough
CT: control target
= control target key end

     0   :  { %10 = vsyncpa [#allocation4], 0  ;;  %s556_s0 = inlined_call_operand.hbm [shape: f32[16,32], index: 0, kind: input, shape index: {}]   ;;  %s557_s1 = inlined_call_operand.hbm [shape: f32[32,32], index: 1, kind: input, shape index: {}]   ;;  %s558_s2 = inlined_call_operand.hbm [shape: f32[3,32], index: 2, kind: input, shape index: {}]   ;;  %s559_s3 = inlined_call_operand.hbm [shape: f32[32,128], index: 3, kind: input, shape index: {}]   ;;  %s560_s4 = inlined_call_operand.vmem [shape: f32[1,128], index: 4, kind: input, shape index: {}]   ;;  %s561_s5 = inlined_call_operand.hbm [shape: f32[16,128], index: 5, kind: output, shape index: {}]  }
   0x1   :  { %11 = vsyncpa [#allocation7], 0 }
   0x2   :  { %12 = vsyncpa [#allocation10], 0 }
   0x3   :  { %13 = vsyncpa [#allocation5], 0  ;;  %s31_s20 = sshll.u32 %s557_s1, 4  ;;  %s468_s21 = smov [#allocation6]   ;;  %s32_s20 = int_to_ptr.hbm [resolvable:$true] %s31_s20 }
   0x4   :  { %s33_s22 = sshll.u32 %s468_s21, 4  ;;  %s18_s25 = sshll.u32 %s556_s0, 4  ;;  %s34_s22 = int_to_ptr.vmem [resolvable:$true] %s33_s22  ;;  %s19_s25 = int_to_ptr.hbm [resolvable:$true] %s18_s25 }
   0x5   :  { %s469_s26 = smov 128   ;;  %s470_s27 = smov 8  }
   0x6   :  { %39 = dma.hbm_to_vmem [thread:$0]  %s32_s20, 512, %s34_s22, [#allocation7], %s469_s26, %s469_s26, %s470_s27  }
   0x7   :  { %s471_s28 = smov [#allocation3]   ;;  %s45_s1 = sshll.u32 %s558_s2, 4  ;;  %s46_s1 = int_to_ptr.hbm [resolvable:$true] %s45_s1 }
   0x8   :  { %s20_s29 = sshll.u32 %s471_s28, 4  ;;  %s55_s8 = sshll.u32 %s559_s3, 4  ;;  %s21_s29 = int_to_ptr.vmem [resolvable:$true] %s20_s29  ;;  %s56_s8 = int_to_ptr.hbm [resolvable:$true] %s55_s8 }
   0x9   :  { %26 = dma.hbm_to_vmem [thread:$0]  %s19_s25, 256, %s21_s29, [#allocation4], %s469_s26, %s469_s26, %s470_s27  }
   0xa   :  { %s472_s9 = smov [#allocation8]   ;;  %s473_s11 = smov [#allocation9]  }
   0xb   :  { %s47_s10 = sshll.u32 %s472_s9, 4  ;;  %s57_s12 = sshll.u32 %s473_s11, 4  ;;  %s48_s10 = int_to_ptr.vmem [resolvable:$true] %s47_s10  ;;  %s58_s12 = int_to_ptr.vmem [resolvable:$true] %s57_s12 }
   0xc   :  { %50 = dma.hbm_to_vmem [thread:$0]  %s46_s1, 64, %s48_s10, [#allocation7]  }
   0xd   :  { %63 = dma.hbm_to_vmem [thread:$0]  %s56_s8, 512, %s58_s12, [#allocation10], %s469_s26, %s469_s26, %s470_s27  }
   0xe   :  { %460 = dma.done.wait [#allocation4], 256  }
   0xf   :  { %461 = vsyncadd [#allocation4], 4294967040 }
  0x10   :  { %462 = dma.done.wait [#allocation7], 576  }
  0x11   :  { %463 = vsyncadd [#allocation7], 4294966720 }
  0x12   :  { %464 = dma.done.wait [#allocation10], 512  }
  0x13   :  { %465 = vsyncadd [#allocation10], 4294966784  ;;  %v91_v0 = vld [vmem:[#allocation6 + $0x18] sm:$0xff]  ;;  %v90_v1 = vld [vmem:[#allocation6 + $0x10] sm:$0xff]  ;;  %vm94_vm0 = vcmask 261120   ;;  %v474_v58 = vmov -1.0  }
  0x14   :  { %113 = vmatpush.msra.mxu0 %v91_v0  ;;  %308 = vmatpush.msra.mxu2 %v91_v0  ;;  %v89_v2 = vld [vmem:[#allocation6 + $0x8] sm:$0xff]  ;;  %v88_v3 = vld [vmem:[#allocation6] sm:$0xff]  ;;  %v86_v4 = vld [vmem:[#allocation3] sm:$0xff]  ;;  %s476_s13 = smov [#allocation11]   ;;  %s289_s17 = sshll.u32 %s561_s5, 4  ;;  %s290_s17 = int_to_ptr.hbm [resolvable:$true] %s289_s17 }
  0x15   :  { %v87_v5 = vld [vmem:[#allocation3 + $0x8] sm:$0xff]  ;;  %v530_v6 = vld [vmem:[#allocation8] sm:$0x7]  ;;  %s287_s14 = sshll.u32 %s476_s13, 4  ;;  %s288_s14 = int_to_ptr.vmem [resolvable:$true] %s287_s14 }
  0x16   :  { %114 = vmatpush.msra.mxu0 %v90_v1  ;;  %309 = vmatpush.msra.mxu2 %v90_v1  ;;  %v93_v7 = vperm.slane %v530_v6, 0 }
  0x18   :  { %115 = vmatpush.msra.mxu0 %v89_v2  ;;  %310 = vmatpush.msra.mxu2 %v89_v2 }
  0x1a   :  { %116 = vmatpush.msra.mxu0 %v88_v3  ;;  %311 = vmatpush.msra.mxu2 %v88_v3 }
  0x1b   :  { %304 = vmatmul.msk.f32.vlgmr.msra.gmra.mxu0 %vm94_vm0, %v86_v4  ;;  %305 = vmatmul.msk.f32.vlgmr.msra.gmra.mxu2 %vm94_vm0, %v87_v5 }
  0x98   :  { %v118_v8 = vpop.f32.mrf.mxu0 }
  0x99   :  { %v533_v9 = vadd.f32 %v118_v8, %v93_v7  ;;  %v475_v8 = vmov 32.0  }
  0x9b   :  { %v126_v10 = vmul.f32 0.70710677, %v533_v9  ;;  %v124_v4 = vmul.f32 0.5, %v533_v9 }
  0x9d   :  { %v132_v11 = vand.u32 2147483647, %v126_v10  ;;  %vm128_vm2 = vcmp.ge.f32.partialorder %v126_v10, 0.0 }
  0x9e   :  { %v121_v12 = vpop.f32.mrf.mxu2  ;;  %v130_v61 = vsel %vm128_vm2, 1.0, %v474_v58 }
  0x9f   :  { %v134_v13 = vmul.f32 0.3275911, %v132_v11  ;;  %v122_v14 = vadd.f32 %v121_v12, %v93_v7  ;;  %v164_v29 = vsub.f32 0.0, %v132_v11 }
  0xa1   :  { %v136_v15 = vadd.f32 1.0, %v134_v13  ;;  %v127_v16 = vmul.f32 0.70710677, %v122_v14  ;;  %v166_v35 = vmul.f32 %v164_v29, %v132_v11  ;;  %v125_v62 = vmul.f32 0.5, %v122_v14  ;;  %v244_v29 = vld [vmem:[#allocation9 + $0x8] sm:$0xff] }
  0xa3   :  { %326 = vrcp.f32 %v136_v15  ;;  %v133_v17 = vand.u32 2147483647, %v127_v16  ;;  %v168_v41 = vmul.f32 1.442695, %v166_v35  ;;  %vm129_vm1 = vcmp.ge.f32.partialorder %v127_v16, 0.0 }
  0xa4   :  { %v131_v59 = vsel %vm129_vm1, 1.0, %v474_v58  ;;  %v325_v58 = vld [vmem:[%s560_s4] ss:$0 sm:$0xff] }
  0xa5   :  { %v135_v18 = vmul.f32 0.3275911, %v133_v17  ;;  %v165_v32 = vsub.f32 0.0, %v133_v17 }
  0xa7   :  { %v137_v19 = vadd.f32 1.0, %v135_v18  ;;  %v167_v38 = vmul.f32 %v165_v32, %v133_v17 }
  0xa9   :  { %v327_v20 = vpop.eup %326  ;;  %328 = vrcp.f32 %v137_v19  ;;  %v170_v44 = vmul.f32 1.442695, %v167_v38 }
  0xaa   :  { %v140_v21 = vmul.f32 %v327_v20, %v136_v15  ;;  %330 = vpow2.f32 %v168_v41 }
  0xab   :  { %332 = vpow2.f32 %v170_v44 }
  0xac   :  { %v142_v22 = vsub.f32 2.0, %v140_v21  ;;  %334 = vrcp.f32 %v475_v8 }
  0xae   :  { %v144_v23 = vmul.f32 %v327_v20, %v142_v22 }
  0xaf   :  { %v329_v24 = vpop.eup %328 }
  0xb0   :  { %v141_v25 = vmul.f32 %v329_v24, %v137_v19  ;;  %v146_v26 = vmul.f32 1.0614054, %v144_v23  ;;  %v331_v51 = vpop.eup %330 }
  0xb1   :  { %v333_v54 = vpop.eup %332 }
  0xb2   :  { %v143_v27 = vsub.f32 2.0, %v141_v25  ;;  %v148_v28 = vadd.f32 -1.4531521, %v146_v26  ;;  %v335_v10 = vpop.eup %334  ;;  %v246_v25 = vld [vmem:[#allocation9 + $0x18] sm:$0xff]  ;;  %v245_v26 = vld [vmem:[#allocation9 + $0x10] sm:$0xff] }
  0xb3   :  { %v189_v11 = vmul.f32 32.0, %v335_v10  ;;  %vm193_vm3 = vweird.f32 %v335_v10  ;;  %312 = vmatpush.msra.mxu3 %v246_v25  ;;  %270 = vmatpush.msra.mxu1 %v246_v25 }
  0xb4   :  { %v145_v30 = vmul.f32 %v329_v24, %v143_v27  ;;  %v150_v31 = vmul.f32 %v148_v28, %v144_v23 }
  0xb5   :  { %v190_v12 = vsub.f32 1.0, %v189_v11  ;;  %313 = vmatpush.msra.mxu3 %v245_v26  ;;  %271 = vmatpush.msra.mxu1 %v245_v26 }
  0xb6   :  { %v147_v33 = vmul.f32 1.0614054, %v145_v30  ;;  %v152_v34 = vadd.f32 1.4214138, %v150_v31  ;;  %v243_v31 = vld [vmem:[#allocation9] sm:$0xff] }
  0xb7   :  { %v191_v13 = vmul.f32 %v335_v10, %v190_v12  ;;  %314 = vmatpush.msra.mxu3 %v244_v29  ;;  %272 = vmatpush.msra.mxu1 %v244_v29 }
  0xb8   :  { %v149_v36 = vadd.f32 -1.4531521, %v147_v33  ;;  %v154_v37 = vmul.f32 %v152_v34, %v144_v23 }
  0xb9   :  { %v192_v14 = vadd.f32 %v335_v10, %v191_v13  ;;  %315 = vmatpush.msra.mxu3 %v243_v31  ;;  %273 = vmatpush.msra.mxu1 %v243_v31 }
  0xba   :  { %v151_v39 = vmul.f32 %v149_v36, %v145_v30  ;;  %v156_v40 = vadd.f32 -0.28449672, %v154_v37 }
  0xbb   :  { %v194_v15 = vsel %vm193_vm3, %v335_v10, %v192_v14 }
  0xbc   :  { %v153_v42 = vadd.f32 1.4214138, %v151_v39  ;;  %v158_v43 = vmul.f32 %v156_v40, %v144_v23 }
  0xbe   :  { %v155_v45 = vmul.f32 %v153_v42, %v145_v30  ;;  %v160_v46 = vadd.f32 0.2548296, %v158_v43  ;;  %v233_v43 = vperm.slane %v530_v6, 1 }
  0xc0   :  { %v157_v47 = vadd.f32 -0.28449672, %v155_v45  ;;  %v162_v49 = vmul.f32 %v160_v46, %v144_v23  ;;  %v236_v46 = vperm.slane %v530_v6, 2 }
  0xc2   :  { %v159_v48 = vmul.f32 %v157_v47, %v145_v30  ;;  %v172_v53 = vmul.f32 %v331_v51, %v162_v49 }
  0xc4   :  { %v161_v50 = vadd.f32 0.2548296, %v159_v48  ;;  %v174_v57 = vsub.f32 1.0, %v172_v53 }
  0xc6   :  { %v163_v52 = vmul.f32 %v161_v50, %v145_v30  ;;  %v176_v0 = vmul.f32 %v174_v57, %v130_v61 }
  0xc8   :  { %v173_v55 = vmul.f32 %v333_v54, %v163_v52  ;;  %v178_v3 = vadd.f32 1.0, %v176_v0 }
  0xca   :  { %v175_v56 = vsub.f32 1.0, %v173_v55  ;;  %v180_v5 = vmul.f32 %v178_v3, %v124_v4 }
  0xcc   :  { %v177_v60 = vmul.f32 %v175_v56, %v131_v59  ;;  %v182_v7 = vsel %vm94_vm0, %v180_v5, 0.0 }
  0xce   :  { %v179_v63 = vadd.f32 1.0, %v177_v60 }
  0xd0   :  { %v181_v1 = vmul.f32 %v179_v63, %v125_v62 }
  0xd2   :  { %v185_v2 = vsel %vm94_vm0, %v181_v1, 0.0 }
  0xd3   :  { %186 = vadd.xlane.f32.xlu0 %v185_v2 }
  0xdb   :  { %183 = vadd.xlane.f32.xlu0 %v182_v7 }
 0x146   :  { %v187_v16 = vpop.xlane.xlu0 %186 }
 0x147   :  { %v196_v17 = vmul.f32 %v194_v15, %v187_v16 }
 0x149   :  { %v198_v18 = vsub.f32 %v181_v1, %v196_v17 }
 0x14b   :  { %v200_v19 = vmul.f32 %v198_v18, %v198_v18 }
 0x14d   :  { %v204_v20 = vsel %vm94_vm0, %v200_v19, 0.0 }
 0x14e   :  { %205 = vadd.xlane.f32.xlu1 %v204_v20  ;;  %v184_v9 = vpop.xlane.xlu0 %183 }
 0x14f   :  { %v195_v21 = vmul.f32 %v194_v15, %v184_v9 }
 0x151   :  { %v197_v22 = vsub.f32 %v180_v5, %v195_v21 }
 0x153   :  { %v199_v23 = vmul.f32 %v197_v22, %v197_v22 }
 0x155   :  { %v201_v24 = vsel %vm94_vm0, %v199_v23, 0.0 }
 0x156   :  { %202 = vadd.xlane.f32.xlu1 %v201_v24 }
 0x1c1   :  { %v206_v27 = vpop.xlane.xlu1 %205 }
 0x1c2   :  { %v208_v28 = vmul.f32 %v206_v27, %v194_v15 }
 0x1c4   :  { %v210_v30 = vadd.f32 1e-05, %v208_v28 }
 0x1c6   :  { %336 = vrsqrt.f32 %v210_v30  ;;  %vm227_vm5 = vweird.f32 %v210_v30 }
 0x1c9   :  { %v203_v32 = vpop.xlane.xlu1 %202 }
 0x1ca   :  { %v207_v33 = vmul.f32 %v203_v32, %v194_v15 }
 0x1cc   :  { %v337_v34 = vpop.eup %336  ;;  %v209_v35 = vadd.f32 1e-05, %v207_v33 }
 0x1cd   :  { %v222_v36 = vmul.f32 %v337_v34, %v210_v30  ;;  %vm228_vm4 = vweird.f32 %v337_v34 }
 0x1ce   :  { %338 = vrsqrt.f32 %v209_v35  ;;  %vm229_vm6 = vmor %vm227_vm5, %vm228_vm4  ;;  %vm217_vm8 = vweird.f32 %v209_v35 }
 0x1cf   :  { %v223_v37 = vmul.f32 %v337_v34, %v222_v36 }
 0x1d1   :  { %v224_v38 = vmul.f32 0.5, %v223_v37 }
 0x1d3   :  { %v225_v39 = vsub.f32 1.5, %v224_v38 }
 0x1d4   :  { %v339_v40 = vpop.eup %338 }
 0x1d5   :  { %v226_v41 = vmul.f32 %v337_v34, %v225_v39  ;;  %v212_v42 = vmul.f32 %v339_v40, %v209_v35  ;;  %vm218_vm7 = vweird.f32 %v339_v40 }
 0x1d6   :  { %vm219_vm9 = vmor %vm217_vm8, %vm218_vm7 }
 0x1d7   :  { %v230_v44 = vsel %vm229_vm6, %v337_v34, %v226_v41  ;;  %v213_v45 = vmul.f32 %v339_v40, %v212_v42 }
 0x1d8   :  { %v232_v47 = vmul.f32 %v230_v44, %v198_v18 }
 0x1d9   :  { %v214_v48 = vmul.f32 0.5, %v213_v45 }
 0x1da   :  { %v235_v49 = vmul.f32 %v233_v43, %v232_v47 }
 0x1db   :  { %v215_v50 = vsub.f32 1.5, %v214_v48 }
 0x1dc   :  { %v238_v51 = vadd.f32 %v236_v46, %v235_v49 }
 0x1dd   :  { %v216_v52 = vmul.f32 %v339_v40, %v215_v50 }
 0x1de   :  { %240 = vst.msk [vmem:[#allocation2 + $0x8] sm:$0xff] %vm94_vm0, %v238_v51 }
 0x1df   :  { %v220_v53 = vsel %vm219_vm9, %v339_v40, %v216_v52 }
 0x1e0   :  { %v231_v54 = vmul.f32 %v220_v53, %v197_v22 }
 0x1e2   :  { %v234_v55 = vmul.f32 %v233_v43, %v231_v54 }
 0x1e4   :  { %v237_v56 = vadd.f32 %v236_v46, %v234_v55 }
 0x1e5   :  { %v242_v57 = vld [vmem:[#allocation2 + $0x8] sm:$0xff] }
 0x1e6   :  { %239 = vst.msk [vmem:[#allocation2] sm:$0xff] %vm94_vm0, %v237_v56  ;;  %307 = vmatmul.msk.f32.vlgmr.msra.gmra.mxu3 %vm94_vm0, %v242_v57 }
 0x1ed   :  { %v241_v6 = vld [vmem:[#allocation2] sm:$0xff] }
 0x1ee   :  { %306 = vmatmul.msk.f32.vlgmr.msra.gmra.mxu1 %vm94_vm0, %v241_v6 }
 0x269   :  { %v278_v59 = vpop.f32.mrf.mxu3 }
 0x26a   :  { %v279_v60 = vadd.f32 %v325_v58, %v278_v59 }
 0x26b   :  { %v275_v61 = vpop.f32.mrf.mxu1 }
 0x26c   :  { %282 = vst [vmem:[#allocation11 + $0x8] sm:$0xff] %v279_v60  ;;  %v276_v62 = vadd.f32 %v325_v58, %v275_v61 }
 0x26e   :  { %281 = vst [vmem:[#allocation11] sm:$0xff] %v276_v62 }
 0x26f   :  { %295 = dma.vmem_to_hbm [thread:$0]  %s288_s14, 256, %s290_s17, [#allocation5], %s469_s26, %s469_s26, %s470_s27  }
 0x270   :  { %466 = dma.done.wait [#allocation5], 256  }
 0x271   :  { %467 = vsyncadd [#allocation5], 4294967040 }
 0x272   :  { %300 = vsyncpa [#allocation4], 1 }
 0x273   :  { %301 = vsyncpa [#allocation7], 1 }
 0x274   :  { %302 = vsyncpa [#allocation10], 1 }
 0x275   :  { %303 = vsyncpa [#allocation5], 1 }

</bundles_post_ra>
